<compile_context>
chip_gen: v7x
topology: tpu7x:2x2x1
jax: 0.10.0
libtpu: 0.0.40
codegen_flags: <defaults>
</compile_context>

<pallas_src>
import jax
import jax.numpy as jnp
import numpy as np
from jax import lax
from jax.experimental import pallas as pl
from jax.experimental.pallas import tpu as pltpu

_MAX_BATCH_BLOCK = 128   # rows per batch block (MXU-friendly upper bound)
_MAX_UNROLL = 8          # cap on time-loop unroll (vreg pressure at long S)


def _choose_block(batch):
    """Cover the padded batch in <=2 sublane-aligned blocks (<=128 rows each).

    Two (or 2N) blocks keep both v7x TensorCores busy through the 'parallel'
    grid axis; on v5e/v6e the fewest, biggest blocks minimize the ~0.35us
    per-grid-step pipeline overhead.
    """
    half = -(-batch // 2)                                  # ceil(batch / 2)
    bb = max(8, min(_MAX_BATCH_BLOCK, ((half + 7) // 8) * 8))
    n_blk = -(-batch // bb)
    return bb, n_blk, n_blk * bb


# ----------------------------------------------------------------------------
# Pallas kernel (one batch block per grid step)
# ----------------------------------------------------------------------------
def _attentive_rnn_kernel(
    xemb_ref,   # (S*BB, E) bf16  time-major within the block (row = t*BB + b)
    wih_ref,    # (E, H)    bf16  transposed PyTorch weight_ih_l0
    whh_ref,    # (H, H)    bf16  transposed weight_hh_l0 (MXU operand)
    b_ref,      # (1, H)    f32   b_ih + b_hh
    wout_ref,   # (1, H)    f32   output Linear weight
    bout_ref,   # (1,)      f32   output Linear bias (SMEM scalar)
    out_ref,    # (1, BB)   f32   lane-dense logits for this batch block
    xproj_ref,  # scratch VMEM (S*BB, H) f32 precomputed input projections
):
    sb, hid = xproj_ref.shape
    bb = out_ref.shape[-1]
    seq_len = sb // bb
    hb = bb // 2  # two independent recurrence chains for latency hiding

    # ---- Phase 1: input projection for ALL timesteps as ONE MXU GEMM --------
    # (no time dependency -> hoisted out of the serial recurrence);
    # bf16 operands, f32 accumulation, bias folded in.
    xproj_ref[...] = (
        jnp.dot(xemb_ref[...], wih_ref[...], preferred_element_type=jnp.float32)
        + b_ref[...]
    )

    # ---- Phase 2: serial Elman recurrence ------------------------------------
    # h_t = tanh(x_proj_t + h_{t-1} @ W_hh^T).  Two independent half-block
    # chains interleave: one chain's bf16 vmatmul issues while the other's
    # tanh drains from the EUP.  MXU operands bf16, add/tanh in f32.
    whh = whh_ref[...]

    def step(t, carry):
        h0, h1 = carry
        row = pl.multiple_of(t * bb, bb)
        x_t = xproj_ref[pl.ds(row, bb), :]                        # (BB, H) f32
        p0 = x_t[:hb] + jnp.dot(h0.astype(jnp.bfloat16), whh,
                                preferred_element_type=jnp.float32)
        p1 = x_t[hb:] + jnp.dot(h1.astype(jnp.bfloat16), whh,
                                preferred_element_type=jnp.float32)
        return jnp.tanh(p0), jnp.tanh(p1)

    h0, h1 = lax.fori_loop(
        0, seq_len, step,
        (jnp.zeros((hb, hid), jnp.float32), jnp.zeros((hb, hid), jnp.float32)),
        unroll=min(seq_len, _MAX_UNROLL),
    )

    # ---- Phase 3: output projection Linear(H, 1) -----------------------------
    # (1,H) @ (H,BB) -> (1, BB): batch on the lane axis -> unmasked, contiguous
    # store (lane-dense out_spec).
    h_last = jnp.concatenate([h0, h1], axis=0)                    # (BB, H) f32
    out_ref[...] = lax.dot_general(
        wout_ref[...], h_last, (((1,), (1,)), ((), ())),
        preferred_element_type=jnp.float32,
    ) + bout_ref[0]


# ----------------------------------------------------------------------------
# Wrapper
# ----------------------------------------------------------------------------
@jax.jit
def attentive_rnn_forward(x_ids, params):
    """x_ids: (B, S) int32 token ids.  Returns (out (B,), attn (B, S))."""
    emb_w = params["embedding"]        # (V, E), row 0 zeroed (padding_idx=0)
    w_ih = params["w_ih"]              # (H, E)  PyTorch layout
    w_hh = params["w_hh"]              # (H, H)
    b_ih = params["b_ih"]              # (H,)
    b_hh = params["b_hh"]              # (H,)
    w_out = params["w_out"]            # (1, H)
    b_out = params["b_out"]            # (1,)

    batch, seq_len = x_ids.shape
    vocab, embed_dim = emb_w.shape
    hidden = w_hh.shape[0]

    bb, n_blk, b_pad = _choose_block(batch)

    # --- glue: pad batch, embedding gather (bf16), per-block time-major slab --
    ids = jnp.pad(x_ids, ((0, b_pad - batch), (0, 0)))            # pad with id 0
    x_emb = emb_w.astype(jnp.bfloat16)[ids]                       # (B_pad, S, E)
    x_emb = x_emb.reshape(n_blk, bb, seq_len, embed_dim)
    x_emb = jnp.transpose(x_emb, (0, 2, 1, 3))                    # (G, S, BB, E)
    x_emb = x_emb.reshape(n_blk, seq_len * bb, embed_dim)         # (G, S*BB, E)

    wih_t = jnp.transpose(w_ih).astype(jnp.bfloat16)              # (E, H) bf16
    whh_t = jnp.transpose(w_hh).astype(jnp.bfloat16)              # (H, H) bf16
    b_comb = (b_ih + b_hh).reshape(1, hidden).astype(jnp.float32)
    wout = w_out.astype(jnp.float32)                              # (1, H)
    bout = b_out.reshape(1).astype(jnp.float32)                   # (1,) SMEM

    out_pad = pl.pallas_call(
        _attentive_rnn_kernel,
        out_shape=jax.ShapeDtypeStruct((n_blk, 1, bb), jnp.float32),
        grid=(n_blk,),
        in_specs=[
            pl.BlockSpec((None, seq_len * bb, embed_dim), lambda g: (g, 0, 0)),
            pl.BlockSpec((embed_dim, hidden), lambda g: (0, 0)),
            pl.BlockSpec((hidden, hidden), lambda g: (0, 0)),
            pl.BlockSpec((1, hidden), lambda g: (0, 0)),
            pl.BlockSpec((1, hidden), lambda g: (0, 0)),
            pl.BlockSpec(memory_space=pltpu.MemorySpace.SMEM),
        ],
        out_specs=pl.BlockSpec((None, 1, bb), lambda g: (g, 0, 0)),
        scratch_shapes=[pltpu.VMEM((seq_len * bb, hidden), jnp.float32)],
        compiler_params=pltpu.CompilerParams(
            dimension_semantics=("parallel",),   # batch blocks -> 2 TCs on v7x
            vmem_limit_bytes=32 * 1024 * 1024,
        ),
    )(x_emb, wih_t, whh_t, b_comb, wout, bout)

    out = out_pad.reshape(-1)[:batch]
    # attention is None -> constant uniform weights; kept in the wrapper so the
    # kernel pays no VMEM / store-slot / writeback cost for a memset.
    attn = jnp.full((batch, seq_len), 1.0 / seq_len, jnp.float32)
    return out, attn


# ----------------------------------------------------------------------------
# Pure-JAX reference (mirrors the PyTorch forward, attention=None branch)
# ----------------------------------------------------------------------------
def reference_forward(x_ids, params):
    emb = params["embedding"][x_ids]                              # (B, S, E)
    batch, seq_len, _ = emb.shape
    hidden = params["w_hh"].shape[0]
    h = jnp.zeros((batch, hidden), jnp.float32)
    for t in range(seq_len):
        h = jnp.tanh(
            emb[:, t, :] @ params["w_ih"].T + params["b_ih"]
            + h @ params["w_hh"].T + params["b_hh"]
        )
    out = h @ params["w_out"].T + params["b_out"]                 # (B, 1)
    attn = jnp.full((batch, seq_len), 1.0 / seq_len, jnp.float32)
    return out[:, 0], attn


# ----------------------------------------------------------------------------
def make_params(key, vocab_size, embed_dim, hidden_dim):
    ks = jax.random.split(key, 7)
    bound = 1.0 / np.sqrt(hidden_dim)
    emb = 0.1 * jax.random.normal(ks[0], (vocab_size, embed_dim), jnp.float32)
    emb = emb.at[0].set(0.0)  # padding_idx=0
    uni = lambda k, shape: jax.random.uniform(k, shape, jnp.float32,
                                              -bound, bound)
    return {
        "embedding": emb,
        "w_ih": uni(ks[1], (hidden_dim, embed_dim)),
        "w_hh": uni(ks[2], (hidden_dim, hidden_dim)),
        "b_ih": uni(ks[3], (hidden_dim,)),
        "b_hh": uni(ks[4], (hidden_dim,)),
        "w_out": uni(ks[5], (1, hidden_dim)),
        "b_out": uni(ks[6], (1,)),
    }


if __name__ == "__main__":
    # small shapes implied by the forward: (batch, seq_len) integer token ids
    # batch=10 pads to 16 -> 2 batch blocks (both v7x TCs), exercising the
    # grid + padding + two-chain recurrence paths.
    BATCH, SEQ, VOCAB, EMBED, HIDDEN = 10, 8, 32, 16, 32

    key = jax.random.PRNGKey(0)
    k_par, k_x = jax.random.split(key)
    params = make_params(k_par, VOCAB, EMBED, HIDDEN)
    x_ids = jax.random.randint(k_x, (BATCH, SEQ), 0, VOCAB, dtype=jnp.int32)

    out, attn = attentive_rnn_forward(x_ids, params)
    out = jax.block_until_ready(out)
    attn = jax.block_until_ready(attn)

    out_ref, attn_ref = reference_forward(x_ids, params)
    assert out.shape == (BATCH,) and attn.shape == (BATCH, SEQ)
    # bf16 embedding/W_ih/W_hh/h MXU operands vs. f32 reference -> bounded
    # mismatch that compounds through S tanh steps (tolerance loosened vs.
    # the f32-recurrence version, per review).
    assert np.allclose(np.asarray(out), np.asarray(out_ref), atol=5e-2, rtol=5e-2)
    assert np.allclose(np.asarray(attn), np.asarray(attn_ref), atol=1e-6)

    print("KERNEL_OK")
</pallas_src>

<mosaic_0001>
module attributes {stable_mosaic.version = 11 : i64} {
  func.func @_attentive_rnn_kernel(%arg0: i32, %arg1: memref<1x64x16xbf16, #tpu.memory_space<vmem>>, %arg2: memref<16x32xbf16, #tpu.memory_space<vmem>>, %arg3: memref<32x32xbf16, #tpu.memory_space<vmem>>, %arg4: memref<1x32xf32, #tpu.memory_space<vmem>>, %arg5: memref<1x32xf32, #tpu.memory_space<vmem>>, %arg6: memref<1xf32, #tpu.memory_space<smem>>, %arg7: memref<1x1x8xf32, #tpu.memory_space<vmem>>, %arg8: memref<64x32xf32, #tpu.memory_space<vmem>>) attributes {dimension_semantics = [#tpu.dimension_semantics<parallel>], iteration_bounds = array<i64: 2>, scalar_prefetch = 0 : i64, scratch_operands = 1 : i64, tpu.core_type = #tpu.core_type<tc>, window_params = [{transform_indices = @transform_0, window_bounds = array<i64: 1, 64, 16>}, {pipeline_mode = #tpu.pipeline_mode<synchronous>, transform_indices = @transform_1, window_bounds = array<i64: 16, 32>}, {pipeline_mode = #tpu.pipeline_mode<synchronous>, transform_indices = @transform_2, window_bounds = array<i64: 32, 32>}, {pipeline_mode = #tpu.pipeline_mode<synchronous>, transform_indices = @transform_3, window_bounds = array<i64: 1, 32>}, {pipeline_mode = #tpu.pipeline_mode<synchronous>, transform_indices = @transform_4, window_bounds = array<i64: 1, 32>}, {transform_indices = @transform_5, window_bounds = array<i64: 1>}, {transform_indices = @transform_6, window_bounds = array<i64: 1, 1, 8>}]} {
    %c0 = arith.constant 0 : index
    %c0_0 = arith.constant 0 : index
    %c0_1 = arith.constant 0 : index
    %0 = vector.load %arg1[%c0, %c0_0, %c0_1] : memref<1x64x16xbf16, #tpu.memory_space<vmem>>, vector<1x64x16xbf16>
    %1 = vector.shape_cast %0 : vector<1x64x16xbf16> to vector<64x16xbf16>
    %c0_2 = arith.constant 0 : index
    %c0_3 = arith.constant 0 : index
    %2 = vector.load %arg2[%c0_2, %c0_3] : memref<16x32xbf16, #tpu.memory_space<vmem>>, vector<16x32xbf16>
    %cst = arith.constant dense<0.000000e+00> : vector<64x32xf32>
    %3 = tpu.matmul %1, %2, %cst {dimension_numbers = #tpu.dot_dimension_numbers<[1], [0], [0], [1], [0, 0, 1, 1], [], []>} : vector<64x16xbf16>, vector<16x32xbf16>, vector<64x32xf32> -> vector<64x32xf32>
    %c0_4 = arith.constant 0 : index
    %c0_5 = arith.constant 0 : index
    %4 = vector.load %arg4[%c0_4, %c0_5] : memref<1x32xf32, #tpu.memory_space<vmem>>, vector<1x32xf32>
    %5 = vector.broadcast %4 : vector<1x32xf32> to vector<64x32xf32>
    %6 = arith.addf %3, %5 : vector<64x32xf32>
    %c0_6 = arith.constant 0 : index
    %c0_7 = arith.constant 0 : index
    %7 = vector.load %arg8[%c0_6, %c0_7] : memref<64x32xf32, #tpu.memory_space<vmem>>, vector<64x32xf32>
    tpu.vector_store %arg8[%c0_6, %c0_7], %6 {strides = array<i32>} : memref<64x32xf32, #tpu.memory_space<vmem>>, vector<64x32xf32>,
    %c0_8 = arith.constant 0 : index
    %c0_9 = arith.constant 0 : index
    %8 = vector.load %arg3[%c0_8, %c0_9] : memref<32x32xbf16, #tpu.memory_space<vmem>>, vector<32x32xbf16>
    %cst_10 = arith.constant 0.000000e+00 : f32
    %9 = vector.broadcast %cst_10 : f32 to vector<4x32xf32>
    %cst_11 = arith.constant 0.000000e+00 : f32
    %10 = vector.broadcast %cst_11 : f32 to vector<4x32xf32>
    %c0_i32 = arith.constant 0 : i32
    %c8_i32 = arith.constant 8 : i32
    %11 = arith.muli %c0_i32, %c8_i32 : i32
    %12 = tpu.assume_multiple %11, 8 : i32
    %13 = arith.index_cast %12 : i32 to index
    %c0_12 = arith.constant 0 : index
    %14 = vector.load %arg8[%13, %c0_12] : memref<64x32xf32, #tpu.memory_space<vmem>>, vector<8x32xf32>
    %15 = vector.extract_strided_slice %14 {offsets = [0, 0], sizes = [4, 32], strides = [1, 1]} : vector<8x32xf32> to vector<4x32xf32>
    %16 = arith.truncf %9 : vector<4x32xf32> to vector<4x32xbf16>
    %cst_13 = arith.constant dense<0.000000e+00> : vector<4x32xf32>
    %17 = tpu.matmul %16, %8, %cst_13 {dimension_numbers = #tpu.dot_dimension_numbers<[1], [0], [0], [1], [0, 0, 1, 1], [], []>} : vector<4x32xbf16>, vector<32x32xbf16>, vector<4x32xf32> -> vector<4x32xf32>
    %18 = arith.addf %15, %17 : vector<4x32xf32>
    %19 = vector.extract_strided_slice %14 {offsets = [4, 0], sizes = [4, 32], strides = [1, 1]} : vector<8x32xf32> to vector<4x32xf32>
    %20 = arith.truncf %10 : vector<4x32xf32> to vector<4x32xbf16>
    %cst_14 = arith.constant dense<0.000000e+00> : vector<4x32xf32>
    %21 = tpu.matmul %20, %8, %cst_14 {dimension_numbers = #tpu.dot_dimension_numbers<[1], [0], [0], [1], [0, 0, 1, 1], [], []>} : vector<4x32xbf16>, vector<32x32xbf16>, vector<4x32xf32> -> vector<4x32xf32>
    %22 = arith.addf %19, %21 : vector<4x32xf32>
    %23 = math.tanh %18 : vector<4x32xf32>
    %24 = math.tanh %22 : vector<4x32xf32>
    %c1_i32 = arith.constant 1 : i32
    %c8_i32_15 = arith.constant 8 : i32
    %25 = arith.muli %c1_i32, %c8_i32_15 : i32
    %26 = tpu.assume_multiple %25, 8 : i32
    %27 = arith.index_cast %26 : i32 to index
    %c0_16 = arith.constant 0 : index
    %28 = vector.load %arg8[%27, %c0_16] : memref<64x32xf32, #tpu.memory_space<vmem>>, vector<8x32xf32>
    %29 = vector.extract_strided_slice %28 {offsets = [0, 0], sizes = [4, 32], strides = [1, 1]} : vector<8x32xf32> to vector<4x32xf32>
    %30 = arith.truncf %23 : vector<4x32xf32> to vector<4x32xbf16>
    %cst_17 = arith.constant dense<0.000000e+00> : vector<4x32xf32>
    %31 = tpu.matmul %30, %8, %cst_17 {dimension_numbers = #tpu.dot_dimension_numbers<[1], [0], [0], [1], [0, 0, 1, 1], [], []>} : vector<4x32xbf16>, vector<32x32xbf16>, vector<4x32xf32> -> vector<4x32xf32>
    %32 = arith.addf %29, %31 : vector<4x32xf32>
    %33 = vector.extract_strided_slice %28 {offsets = [4, 0], sizes = [4, 32], strides = [1, 1]} : vector<8x32xf32> to vector<4x32xf32>
    %34 = arith.truncf %24 : vector<4x32xf32> to vector<4x32xbf16>
    %cst_18 = arith.constant dense<0.000000e+00> : vector<4x32xf32>
    %35 = tpu.matmul %34, %8, %cst_18 {dimension_numbers = #tpu.dot_dimension_numbers<[1], [0], [0], [1], [0, 0, 1, 1], [], []>} : vector<4x32xbf16>, vector<32x32xbf16>, vector<4x32xf32> -> vector<4x32xf32>
    %36 = arith.addf %33, %35 : vector<4x32xf32>
    %37 = math.tanh %32 : vector<4x32xf32>
    %38 = math.tanh %36 : vector<4x32xf32>
    %c2_i32 = arith.constant 2 : i32
    %c8_i32_19 = arith.constant 8 : i32
    %39 = arith.muli %c2_i32, %c8_i32_19 : i32
    %40 = tpu.assume_multiple %39, 8 : i32
    %41 = arith.index_cast %40 : i32 to index
    %c0_20 = arith.constant 0 : index
    %42 = vector.load %arg8[%41, %c0_20] : memref<64x32xf32, #tpu.memory_space<vmem>>, vector<8x32xf32>
    %43 = vector.extract_strided_slice %42 {offsets = [0, 0], sizes = [4, 32], strides = [1, 1]} : vector<8x32xf32> to vector<4x32xf32>
    %44 = arith.truncf %37 : vector<4x32xf32> to vector<4x32xbf16>
    %cst_21 = arith.constant dense<0.000000e+00> : vector<4x32xf32>
    %45 = tpu.matmul %44, %8, %cst_21 {dimension_numbers = #tpu.dot_dimension_numbers<[1], [0], [0], [1], [0, 0, 1, 1], [], []>} : vector<4x32xbf16>, vector<32x32xbf16>, vector<4x32xf32> -> vector<4x32xf32>
    %46 = arith.addf %43, %45 : vector<4x32xf32>
    %47 = vector.extract_strided_slice %42 {offsets = [4, 0], sizes = [4, 32], strides = [1, 1]} : vector<8x32xf32> to vector<4x32xf32>
    %48 = arith.truncf %38 : vector<4x32xf32> to vector<4x32xbf16>
    %cst_22 = arith.constant dense<0.000000e+00> : vector<4x32xf32>
    %49 = tpu.matmul %48, %8, %cst_22 {dimension_numbers = #tpu.dot_dimension_numbers<[1], [0], [0], [1], [0, 0, 1, 1], [], []>} : vector<4x32xbf16>, vector<32x32xbf16>, vector<4x32xf32> -> vector<4x32xf32>
    %50 = arith.addf %47, %49 : vector<4x32xf32>
    %51 = math.tanh %46 : vector<4x32xf32>
    %52 = math.tanh %50 : vector<4x32xf32>
    %c3_i32 = arith.constant 3 : i32
    %c8_i32_23 = arith.constant 8 : i32
    %53 = arith.muli %c3_i32, %c8_i32_23 : i32
    %54 = tpu.assume_multiple %53, 8 : i32
    %55 = arith.index_cast %54 : i32 to index
    %c0_24 = arith.constant 0 : index
    %56 = vector.load %arg8[%55, %c0_24] : memref<64x32xf32, #tpu.memory_space<vmem>>, vector<8x32xf32>
    %57 = vector.extract_strided_slice %56 {offsets = [0, 0], sizes = [4, 32], strides = [1, 1]} : vector<8x32xf32> to vector<4x32xf32>
    %58 = arith.truncf %51 : vector<4x32xf32> to vector<4x32xbf16>
    %cst_25 = arith.constant dense<0.000000e+00> : vector<4x32xf32>
    %59 = tpu.matmul %58, %8, %cst_25 {dimension_numbers = #tpu.dot_dimension_numbers<[1], [0], [0], [1], [0, 0, 1, 1], [], []>} : vector<4x32xbf16>, vector<32x32xbf16>, vector<4x32xf32> -> vector<4x32xf32>
    %60 = arith.addf %57, %59 : vector<4x32xf32>
    %61 = vector.extract_strided_slice %56 {offsets = [4, 0], sizes = [4, 32], strides = [1, 1]} : vector<8x32xf32> to vector<4x32xf32>
    %62 = arith.truncf %52 : vector<4x32xf32> to vector<4x32xbf16>
    %cst_26 = arith.constant dense<0.000000e+00> : vector<4x32xf32>
    %63 = tpu.matmul %62, %8, %cst_26 {dimension_numbers = #tpu.dot_dimension_numbers<[1], [0], [0], [1], [0, 0, 1, 1], [], []>} : vector<4x32xbf16>, vector<32x32xbf16>, vector<4x32xf32> -> vector<4x32xf32>
    %64 = arith.addf %61, %63 : vector<4x32xf32>
    %65 = math.tanh %60 : vector<4x32xf32>
    %66 = math.tanh %64 : vector<4x32xf32>
    %c4_i32 = arith.constant 4 : i32
    %c8_i32_27 = arith.constant 8 : i32
    %67 = arith.muli %c4_i32, %c8_i32_27 : i32
    %68 = tpu.assume_multiple %67, 8 : i32
    %69 = arith.index_cast %68 : i32 to index
    %c0_28 = arith.constant 0 : index
    %70 = vector.load %arg8[%69, %c0_28] : memref<64x32xf32, #tpu.memory_space<vmem>>, vector<8x32xf32>
    %71 = vector.extract_strided_slice %70 {offsets = [0, 0], sizes = [4, 32], strides = [1, 1]} : vector<8x32xf32> to vector<4x32xf32>
    %72 = arith.truncf %65 : vector<4x32xf32> to vector<4x32xbf16>
    %cst_29 = arith.constant dense<0.000000e+00> : vector<4x32xf32>
    %73 = tpu.matmul %72, %8, %cst_29 {dimension_numbers = #tpu.dot_dimension_numbers<[1], [0], [0], [1], [0, 0, 1, 1], [], []>} : vector<4x32xbf16>, vector<32x32xbf16>, vector<4x32xf32> -> vector<4x32xf32>
    %74 = arith.addf %71, %73 : vector<4x32xf32>
    %75 = vector.extract_strided_slice %70 {offsets = [4, 0], sizes = [4, 32], strides = [1, 1]} : vector<8x32xf32> to vector<4x32xf32>
    %76 = arith.truncf %66 : vector<4x32xf32> to vector<4x32xbf16>
    %cst_30 = arith.constant dense<0.000000e+00> : vector<4x32xf32>
    %77 = tpu.matmul %76, %8, %cst_30 {dimension_numbers = #tpu.dot_dimension_numbers<[1], [0], [0], [1], [0, 0, 1, 1], [], []>} : vector<4x32xbf16>, vector<32x32xbf16>, vector<4x32xf32> -> vector<4x32xf32>
    %78 = arith.addf %75, %77 : vector<4x32xf32>
    %79 = math.tanh %74 : vector<4x32xf32>
    %80 = math.tanh %78 : vector<4x32xf32>
    %c5_i32 = arith.constant 5 : i32
    %c8_i32_31 = arith.constant 8 : i32
    %81 = arith.muli %c5_i32, %c8_i32_31 : i32
    %82 = tpu.assume_multiple %81, 8 : i32
    %83 = arith.index_cast %82 : i32 to index
    %c0_32 = arith.constant 0 : index
    %84 = vector.load %arg8[%83, %c0_32] : memref<64x32xf32, #tpu.memory_space<vmem>>, vector<8x32xf32>
    %85 = vector.extract_strided_slice %84 {offsets = [0, 0], sizes = [4, 32], strides = [1, 1]} : vector<8x32xf32> to vector<4x32xf32>
    %86 = arith.truncf %79 : vector<4x32xf32> to vector<4x32xbf16>
    %cst_33 = arith.constant dense<0.000000e+00> : vector<4x32xf32>
    %87 = tpu.matmul %86, %8, %cst_33 {dimension_numbers = #tpu.dot_dimension_numbers<[1], [0], [0], [1], [0, 0, 1, 1], [], []>} : vector<4x32xbf16>, vector<32x32xbf16>, vector<4x32xf32> -> vector<4x32xf32>
    %88 = arith.addf %85, %87 : vector<4x32xf32>
    %89 = vector.extract_strided_slice %84 {offsets = [4, 0], sizes = [4, 32], strides = [1, 1]} : vector<8x32xf32> to vector<4x32xf32>
    %90 = arith.truncf %80 : vector<4x32xf32> to vector<4x32xbf16>
    %cst_34 = arith.constant dense<0.000000e+00> : vector<4x32xf32>
    %91 = tpu.matmul %90, %8, %cst_34 {dimension_numbers = #tpu.dot_dimension_numbers<[1], [0], [0], [1], [0, 0, 1, 1], [], []>} : vector<4x32xbf16>, vector<32x32xbf16>, vector<4x32xf32> -> vector<4x32xf32>
    %92 = arith.addf %89, %91 : vector<4x32xf32>
    %93 = math.tanh %88 : vector<4x32xf32>
    %94 = math.tanh %92 : vector<4x32xf32>
    %c6_i32 = arith.constant 6 : i32
    %c8_i32_35 = arith.constant 8 : i32
    %95 = arith.muli %c6_i32, %c8_i32_35 : i32
    %96 = tpu.assume_multiple %95, 8 : i32
    %97 = arith.index_cast %96 : i32 to index
    %c0_36 = arith.constant 0 : index
    %98 = vector.load %arg8[%97, %c0_36] : memref<64x32xf32, #tpu.memory_space<vmem>>, vector<8x32xf32>
    %99 = vector.extract_strided_slice %98 {offsets = [0, 0], sizes = [4, 32], strides = [1, 1]} : vector<8x32xf32> to vector<4x32xf32>
    %100 = arith.truncf %93 : vector<4x32xf32> to vector<4x32xbf16>
    %cst_37 = arith.constant dense<0.000000e+00> : vector<4x32xf32>
    %101 = tpu.matmul %100, %8, %cst_37 {dimension_numbers = #tpu.dot_dimension_numbers<[1], [0], [0], [1], [0, 0, 1, 1], [], []>} : vector<4x32xbf16>, vector<32x32xbf16>, vector<4x32xf32> -> vector<4x32xf32>
    %102 = arith.addf %99, %101 : vector<4x32xf32>
    %103 = vector.extract_strided_slice %98 {offsets = [4, 0], sizes = [4, 32], strides = [1, 1]} : vector<8x32xf32> to vector<4x32xf32>
    %104 = arith.truncf %94 : vector<4x32xf32> to vector<4x32xbf16>
    %cst_38 = arith.constant dense<0.000000e+00> : vector<4x32xf32>
    %105 = tpu.matmul %104, %8, %cst_38 {dimension_numbers = #tpu.dot_dimension_numbers<[1], [0], [0], [1], [0, 0, 1, 1], [], []>} : vector<4x32xbf16>, vector<32x32xbf16>, vector<4x32xf32> -> vector<4x32xf32>
    %106 = arith.addf %103, %105 : vector<4x32xf32>
    %107 = math.tanh %102 : vector<4x32xf32>
    %108 = math.tanh %106 : vector<4x32xf32>
    %c7_i32 = arith.constant 7 : i32
    %c8_i32_39 = arith.constant 8 : i32
    %109 = arith.muli %c7_i32, %c8_i32_39 : i32
    %110 = tpu.assume_multiple %109, 8 : i32
    %111 = arith.index_cast %110 : i32 to index
    %c0_40 = arith.constant 0 : index
    %112 = vector.load %arg8[%111, %c0_40] : memref<64x32xf32, #tpu.memory_space<vmem>>, vector<8x32xf32>
    %113 = vector.extract_strided_slice %112 {offsets = [0, 0], sizes = [4, 32], strides = [1, 1]} : vector<8x32xf32> to vector<4x32xf32>
    %114 = arith.truncf %107 : vector<4x32xf32> to vector<4x32xbf16>
    %cst_41 = arith.constant dense<0.000000e+00> : vector<4x32xf32>
    %115 = tpu.matmul %114, %8, %cst_41 {dimension_numbers = #tpu.dot_dimension_numbers<[1], [0], [0], [1], [0, 0, 1, 1], [], []>} : vector<4x32xbf16>, vector<32x32xbf16>, vector<4x32xf32> -> vector<4x32xf32>
    %116 = arith.addf %113, %115 : vector<4x32xf32>
    %117 = vector.extract_strided_slice %112 {offsets = [4, 0], sizes = [4, 32], strides = [1, 1]} : vector<8x32xf32> to vector<4x32xf32>
    %118 = arith.truncf %108 : vector<4x32xf32> to vector<4x32xbf16>
    %cst_42 = arith.constant dense<0.000000e+00> : vector<4x32xf32>
    %119 = tpu.matmul %118, %8, %cst_42 {dimension_numbers = #tpu.dot_dimension_numbers<[1], [0], [0], [1], [0, 0, 1, 1], [], []>} : vector<4x32xbf16>, vector<32x32xbf16>, vector<4x32xf32> -> vector<4x32xf32>
    %120 = arith.addf %117, %119 : vector<4x32xf32>
    %121 = math.tanh %116 : vector<4x32xf32>
    %122 = math.tanh %120 : vector<4x32xf32>
    %c8_i32_43 = arith.constant 8 : i32
    %123 = tpu.concatenate %121, %122 in 0 : vector<4x32xf32>, vector<4x32xf32> -> vector<8x32xf32>
    %c0_44 = arith.constant 0 : index
    %c0_45 = arith.constant 0 : index
    %124 = vector.load %arg5[%c0_44, %c0_45] : memref<1x32xf32, #tpu.memory_space<vmem>>, vector<1x32xf32>
    %cst_46 = arith.constant dense<0.000000e+00> : vector<1x8xf32>
    %125 = tpu.matmul %124, %123, %cst_46 {dimension_numbers = #tpu.dot_dimension_numbers<[1], [1], [0], [0], [0, 0, 1, 0], [], []>} : vector<1x32xf32>, vector<8x32xf32>, vector<1x8xf32> -> vector<1x8xf32>
    %c0_47 = arith.constant 0 : index
    %126 = memref.load %arg6[%c0_47] : memref<1xf32, #tpu.memory_space<smem>>
    %127 = vector.broadcast %126 : f32 to vector<1x8xf32>
    %128 = arith.addf %125, %127 : vector<1x8xf32>
    %c0_48 = arith.constant 0 : index
    %c0_49 = arith.constant 0 : index
    %c0_50 = arith.constant 0 : index
    %129 = vector.load %arg7[%c0_48, %c0_49, %c0_50] : memref<1x1x8xf32, #tpu.memory_space<vmem>>, vector<1x1x8xf32>
    %130 = vector.shape_cast %129 : vector<1x1x8xf32> to vector<1x8xf32>
    %131 = vector.shape_cast %128 : vector<1x8xf32> to vector<1x1x8xf32>
    tpu.vector_store %arg7[%c0_48, %c0_49, %c0_50], %131 {strides = array<i32>} : memref<1x1x8xf32, #tpu.memory_space<vmem>>, vector<1x1x8xf32>,
    return
  }
  func.func @transform_0(%arg0: i32) -> (i32, i32, i32) {
    %c0_i32 = arith.constant 0 : i32
    %c0_i32_0 = arith.constant 0 : i32
    %c0_i32_1 = arith.constant 0 : i32
    return %arg0, %c0_i32, %c0_i32_0 : i32, i32, i32
  }
  func.func @transform_1(%arg0: i32) -> (i32, i32) {
    %c0_i32 = arith.constant 0 : i32
    %c0_i32_0 = arith.constant 0 : i32
    %c0_i32_1 = arith.constant 0 : i32
    return %c0_i32, %c0_i32_0 : i32, i32
  }
  func.func @transform_2(%arg0: i32) -> (i32, i32) {
    %c0_i32 = arith.constant 0 : i32
    %c0_i32_0 = arith.constant 0 : i32
    %c0_i32_1 = arith.constant 0 : i32
    return %c0_i32, %c0_i32_0 : i32, i32
  }
  func.func @transform_3(%arg0: i32) -> (i32, i32) {
    %c0_i32 = arith.constant 0 : i32
    %c0_i32_0 = arith.constant 0 : i32
    %c0_i32_1 = arith.constant 0 : i32
    return %c0_i32, %c0_i32_0 : i32, i32
  }
  func.func @transform_4(%arg0: i32) -> (i32, i32) {
    %c0_i32 = arith.constant 0 : i32
    %c0_i32_0 = arith.constant 0 : i32
    %c0_i32_1 = arith.constant 0 : i32
    return %c0_i32, %c0_i32_0 : i32, i32
  }
  func.func @transform_5(%arg0: i32) -> i32 {
    %c0_i32 = arith.constant 0 : i32
    %c0_i32_0 = arith.constant 0 : i32
    return %c0_i32 : i32
  }
  func.func @transform_6(%arg0: i32) -> (i32, i32, i32) {
    %c0_i32 = arith.constant 0 : i32
    %c0_i32_0 = arith.constant 0 : i32
    %c0_i32_1 = arith.constant 0 : i32
    return %arg0, %c0_i32, %c0_i32_0 : i32, i32, i32
  }
}

</mosaic_0001>

<bundles_post_ra>
// kernel: attentive_rnn_forward.1
= control target key start
LH: loop header
LB: loop body
LE: loop exit
PB: predicated region body
PF: predicated region fallthrough
CT: control target
= control target key end

     0   :  { %s1594_s23 = smov 0   ;;  %s1755_s0 = inlined_call_operand.vmem [shape: bf16[2,64,16], index: 0, kind: input, shape index: {}]   ;;  %s1756_s1 = inlined_call_operand.vmem [shape: bf16[16,32], index: 1, kind: input, shape index: {}]   ;;  %s1757_s2 = inlined_call_operand.vmem [shape: bf16[32,32], index: 2, kind: input, shape index: {}]   ;;  %s1758_s3 = inlined_call_operand.vmem [shape: f32[1,32], index: 3, kind: input, shape index: {}]   ;;  %s1759_s4 = inlined_call_operand.vmem [shape: f32[1,32], index: 4, kind: input, shape index: {}]   ;;  %s1760_s5 = inlined_call_operand.<no memory space> [shape: f32[1], index: 5, kind: input, shape index: {}]   ;;  %s1761_s6 = inlined_call_operand.vmem [shape: f32[2,1,8], index: 6, kind: output, shape index: {}]  }
   0x1   :  { %11 = sst [smem:[#allocation3]] %s1760_s5 }
   0x2 LB: > { %s1270_s24 = sadd.s32 4294967295, %s1551_s23   ;;  %p1274_p0 = scmp.ge.s32.totalorder %s1551_s23, 1  ;;  %s1551_s23 = sphi %s1594_s23, %s17_s23  }
   0x3   : > { %p213_p1 = scmp.lt.s32.totalorder %s1551_s23, 3 }
   0x5   : > { %p214_p2 = pnand %p1274_p0, %p213_p1 }
   0x6   : > { %v1506_v0 = vld [vmem:[%s1756_s1] sm:$0xff] (!%p214_p2)   ;;  %v1553_v1 = vmov (!%p214_p2), 0.0   ;;  %p241_p3 = scmp.lt.s32.totalorder (!%p214_p2), %s1270_s24, 1  ;;  %vm1554_vm0 = vmmov (!%p214_p2), 0   ;;  %v1619_v3 = vld [vmem:[%s1757_s2 + $0x8] sm:$0xff] (!%p214_p2)   ;;  %vm293_vm1 = vcmask (!%p214_p2), 130048  }
   0x7   : > { %217 = sbr.rel (%p214_p2) target bundleno = 2092 (0x82c), region = 44  ;;  %1370 = vmatprep.subr.bf16.mxu1 (!%p214_p2), %v1553_v1  ;;  %1360 = vmatprep.subr.bf16.mxu0 (!%p214_p2), %v1506_v0  ;;  %v1609_v2 = vld [vmem:[%s1757_s2] sm:$0xff] (!%p214_p2)   ;;  %v1555_v6 = vmov (!%p214_p2), 0   ;;  %vm371_vm2 = vcmask (!%p214_p2), 261120   ;;  %vm1140_vm3 = vcmask (!%p214_p2), 1043456   ;;  %s1143_s14 = sld [smem:[#allocation3]] (!%p214_p2) }
   0x8   : > { %1361 = vmatpush3.bf16.msra.mxu0 (!%p214_p2), %v1506_v0  ;;  %1374 = vmatprep.mubr.msk.bf16.mxu1 (!%p214_p2), %vm1554_vm0, %v1553_v1  ;;  %v1277_v9 = vld [vmem:[%s1758_s3] ss:$0 sm:$0xff] (!%p214_p2)  ;;  %vm1221_vm4 = vcmask (!%p214_p2), 57344  }
   0x9   : > { %1371 = vmatpush3.bf16.msra.mxu1 (!%p214_p2), %v1609_v2  ;;  %1386 = vmatprep.subr.bf16.mxu0 (!%p214_p2), %v1553_v1 }
   0xa   : > { %1372 = vmatprep.subr.bf16.mxu1 (!%p214_p2), %v1553_v1 }
   0xd   : > { %1373 = vmatpush3.bf16.msra.mxu1 (!%p214_p2), %v1619_v3 }
   0xe   : > { %s1763_s24 = smov (!%p241_p3, %s1270_s24), 1  ;;  %1378 = vmatprep.subr.bf16.mxu1 %v1553_v1 }
   0xf   : > { %s1307_s30 = sshll.u32 %s1763_s24, 5  ;;  %s248_s17 = scalar_lea.vmem %s1761_s6, %s1763_s24 }
  0x10   : > { %s245_s9 = scalar_lea.vmem %s1755_s0, %s1307_s30  ;;  %1375 = vmatmul.mubr.bf16.vlgmr.msra.gmra.mrb[0].mxu1 %v1555_v6 }
  0x11   : > { %v1507_v4 = vld [vmem:[%s245_s9] sm:$0xff]   ;;  %v1509_v5 = vld [vmem:[%s245_s9 + $0x8] sm:$0xff]   ;;  %1379 = vmatpush3.bf16.msra.mxu1 %v1609_v2  ;;  %1382 = vmatprep.mubr.msk.bf16.mxu1 %vm1554_vm0, %v1553_v1  ;;  %v1511_v7 = vld [vmem:[%s245_s9 + $0x10] sm:$0xff]  }
  0x12   : > { %1362 = vmatprep.mubr.msk.bf16.mxu0 %vm293_vm1, %v1507_v4  ;;  %1380 = vmatprep.subr.bf16.mxu1 %v1553_v1  ;;  %v1512_v8 = vld [vmem:[%s245_s9 + $0x18] sm:$0xff]  }
  0x13   : > { %1363 = vmatmul.mubr.msk.bf16.vlgmr.msra.gmra.mrb[0].mxu0 %vm293_vm1, %v1509_v5 }
  0x14   : > { %1387 = vmatpush3.bf16.msra.mxu0 %v1609_v2  ;;  %1366 = vmatprep.mubr.msk.bf16.mxu0 %vm293_vm1, %v1511_v7 }
  0x15   : > { %1388 = vmatprep.subr.bf16.mxu0 %v1553_v1  ;;  %1381 = vmatpush3.bf16.msra.mxu1 %v1619_v3 }
  0x16   : > { %1394 = vmatprep.subr.bf16.mxu1 %v1553_v1 }
  0x18   : > { %1389 = vmatpush3.bf16.msra.mxu0 %v1619_v3 }
  0x19   : > { %1402 = vmatprep.subr.bf16.mxu0 %v1553_v1 }
  0x1b   : > { %1367 = vmatmul.mubr.msk.bf16.gmra.mrb[4].mxu0 %vm293_vm1, %v1512_v8 }
  0x1c   : > { %1390 = vmatprep.mubr.msk.bf16.mxu0 %vm1554_vm0, %v1553_v1 }
  0xe3   : > { %v434_v13 = vpop.f32.mrb[0].mxu1 }
  0xe4   : > { %v1376_v16 = vpop.f32.mrb[1].mxu1  ;;  %v442_v22 = vrot.slane %v434_v13, 4 }
  0xe5   : > { %v437_v19 = vpop.f32.mrb[2].mxu1 }
  0xe6   : > { %v1364_v10 = vpop.f32.mrb[0].mxu0  ;;  %v1377_v21 = vpop.f32.mrb[3].mxu1 }
  0xe7   : > { %v349_v11 = vadd.f32 %v1364_v10, %v1277_v9  ;;  %v340_v12 = vpop.f32.mrb[1].mxu0 }
  0xe8   : > { %v341_v14 = vadd.f32 %v1277_v9, %v340_v12  ;;  %v1365_v15 = vpop.f32.mrb[2].mxu0 }
  0xe9   : > { %374 = vst.msk [vmem:[#allocation2 + $0x10] sm:$0xff] %vm371_vm2, %v349_v11  ;;  %v352_v17 = vadd.f32 %v1365_v15, %v1277_v9  ;;  %v343_v18 = vpop.f32.mrb[3].mxu0 }
  0xea   : > { %372 = vst.msk [vmem:[#allocation2] sm:$0xff] %vm371_vm2, %v341_v14  ;;  %v344_v20 = vadd.f32 %v1277_v9, %v343_v18 }
  0xeb   : > { %375 = vst.msk [vmem:[#allocation2 + $0x18] sm:$0xff] %vm371_vm2, %v352_v17 }
  0xec   : > { %373 = vst.msk [vmem:[#allocation2 + $0x8] sm:$0xff] %vm371_vm2, %v344_v20 }
  0xee   : > { %v1368_v31 = vpop.f32.mrb[4].mxu0 }
  0xef   : > { %v365_v32 = vadd.f32 %v1368_v31, %v1277_v9  ;;  %v356_v33 = vpop.f32.mrb[5].mxu0 }
  0xf0   : > { %v357_v34 = vadd.f32 %v1277_v9, %v356_v33  ;;  %v1369_v35 = vpop.f32.mrb[6].mxu0  ;;  %v547_v56 = vld [vmem:[#allocation2 + $0x10] sm:$0xff] }
  0xf1   : > { %v384_v23 = vld [vmem:[#allocation2] sm:$0xff]  ;;  %378 = vst.msk [vmem:[#allocation2 + $0x30] sm:$0xff] %vm371_vm2, %v365_v32  ;;  %v368_v36 = vadd.f32 %v1369_v35, %v1277_v9  ;;  %v359_v37 = vpop.f32.mrb[7].mxu0 }
  0xf2   : > { %v440_v24 = vadd.f32 %v434_v13, %v384_v23  ;;  %v444_v25 = vadd.f32 %v442_v22, %v384_v23  ;;  %376 = vst.msk [vmem:[#allocation2 + $0x20] sm:$0xff] %vm371_vm2, %v357_v34  ;;  %v360_v38 = vadd.f32 %v1277_v9, %v359_v37  ;;  %v646_v12 = vld [vmem:[#allocation2 + $0x18] sm:$0xff] }
  0xf3   : > { %379 = vst.msk [vmem:[#allocation2 + $0x38] sm:$0xff] %vm371_vm2, %v368_v36  ;;  %v448_v39 = vld [vmem:[#allocation2 + $0x8] sm:$0xff] }
  0xf4   : > { %1513 = vtanh.f32 %v440_v24  ;;  %377 = vst.msk [vmem:[#allocation2 + $0x28] sm:$0xff] %vm371_vm2, %v360_v38 }
  0xf5   : > { %1515 = vtanh.f32 %v444_v25 }
  0xfe   : > { %v1514_v26 = vpop.eup %1513 }
  0xff   : > { %v1516_v27 = vpop.eup %1515  ;;  %v449_v28 = vpack.c.bf16 %v1514_v26, %v1514_v26 }
 0x100   : > { %v494_v29 = vpack.c.bf16 %v1516_v27, %v1516_v27 }
 0x101   : > { %1383 = vmatmul.mubr.msk.bf16.vlgmr.msra.gmra.mrb[4].mxu1 %vm371_vm2, %v449_v28 }
 0x102   : > { %v496_v30 = vrot.slane %v494_v29, 2  ;;  %1395 = vmatpush3.bf16.msra.mxu1 %v1609_v2  ;;  %1398 = vmatprep.mubr.msk.bf16.mxu1 %vm1554_vm0, %v1553_v1  ;;  %v745_v29 = vld [vmem:[#allocation2 + $0x20] sm:$0xff] }
 0x103   : > { %1396 = vmatprep.subr.bf16.mxu1 %v1553_v1 }
 0x104   : > { %1391 = vmatmul.mubr.msk.bf16.vlgmr.msra.gmra.mrb[8].mxu0 %vm371_vm2, %v496_v30 }
 0x105   : > { %1403 = vmatpush3.bf16.msra.mxu0 %v1609_v2  ;;  %1406 = vmatprep.mubr.msk.bf16.mxu0 %vm1554_vm0, %v1553_v1 }
 0x106   : > { %1397 = vmatpush3.bf16.msra.mxu1 %v1619_v3  ;;  %1404 = vmatprep.subr.bf16.mxu0 %v1553_v1 }
 0x107   : > { %1410 = vmatprep.subr.bf16.mxu1 %v1553_v1 }
 0x109   : > { %1405 = vmatpush3.bf16.msra.mxu0 %v1619_v3 }
 0x10a   : > { %1418 = vmatprep.subr.bf16.mxu0 %v1553_v1 }
 0x1d4   : > { %v487_v40 = vpop.f32.mrb[4].mxu1 }
 0x1d5   : > { %v493_v41 = vadd.f32 %v487_v40, %v448_v39  ;;  %v1384_v42 = vpop.f32.mrb[5].mxu1 }
 0x1d6   : > { %v490_v43 = vpop.f32.mrb[6].mxu1 }
 0x1d7   : > { %1517 = vtanh.f32 %v493_v41  ;;  %v534_v44 = vpop.f32.mrb[8].mxu0  ;;  %v1385_v45 = vpop.f32.mrb[7].mxu1 }
 0x1d8   : > { %v541_v46 = vrot.slane %v534_v44, 4  ;;  %v1392_v47 = vpop.f32.mrb[9].mxu0 }
 0x1d9   : > { %v537_v48 = vpop.f32.mrb[10].mxu0 }
 0x1da   : > { %v543_v49 = vadd.f32 %v541_v46, %v448_v39  ;;  %v1393_v50 = vpop.f32.mrb[11].mxu0  ;;  %v844_v46 = vld [vmem:[#allocation2 + $0x28] sm:$0xff] }
 0x1dc   : > { %1519 = vtanh.f32 %v543_v49 }
 0x1e1   : > { %v1518_v51 = vpop.eup %1517 }
 0x1e2   : > { %v548_v52 = vpack.c.bf16 %v1518_v51, %v1518_v51 }
 0x1e4   : > { %1399 = vmatmul.mubr.msk.bf16.vlgmr.msra.gmra.mrb[8].mxu1 %vm371_vm2, %v548_v52 }
 0x1e5   : > { %1411 = vmatpush3.bf16.msra.mxu1 %v1609_v2  ;;  %1414 = vmatprep.mubr.msk.bf16.mxu1 %vm1554_vm0, %v1553_v1 }
 0x1e6   : > { %v1520_v53 = vpop.eup %1519  ;;  %1412 = vmatprep.subr.bf16.mxu1 %v1553_v1 }
 0x1e7   : > { %v593_v54 = vpack.c.bf16 %v1520_v53, %v1520_v53 }
 0x1e9   : > { %v595_v55 = vrot.slane %v593_v54, 2  ;;  %1413 = vmatpush3.bf16.msra.mxu1 %v1619_v3 }
 0x1ea   : > { %1426 = vmatprep.subr.bf16.mxu1 %v1553_v1 }
 0x1eb   : > { %1407 = vmatmul.mubr.msk.bf16.vlgmr.msra.gmra.mrb[12].mxu0 %vm371_vm2, %v595_v55 }
 0x1ec   : > { %1419 = vmatpush3.bf16.msra.mxu0 %v1609_v2  ;;  %1422 = vmatprep.mubr.msk.bf16.mxu0 %vm1554_vm0, %v1553_v1 }
 0x1ed   : > { %1420 = vmatprep.subr.bf16.mxu0 %v1553_v1 }
 0x1f0   : > { %1421 = vmatpush3.bf16.msra.mxu0 %v1619_v3 }
 0x1f1   : > { %1434 = vmatprep.subr.bf16.mxu0 %v1553_v1 }
 0x2b7   : > { %v586_v57 = vpop.f32.mrb[8].mxu1 }
 0x2b8   : > { %v592_v58 = vadd.f32 %v586_v57, %v547_v56  ;;  %v1400_v59 = vpop.f32.mrb[9].mxu1 }
 0x2b9   : > { %v589_v60 = vpop.f32.mrb[10].mxu1 }
 0x2ba   : > { %1521 = vtanh.f32 %v592_v58  ;;  %v1401_v61 = vpop.f32.mrb[11].mxu1 }
 0x2be   : > { %v633_v62 = vpop.f32.mrb[12].mxu0 }
 0x2bf   : > { %v640_v63 = vrot.slane %v633_v62, 4  ;;  %v1408_v0 = vpop.f32.mrb[13].mxu0 }
 0x2c0   : > { %v636_v4 = vpop.f32.mrb[14].mxu0 }
 0x2c1   : > { %v642_v5 = vadd.f32 %v640_v63, %v547_v56  ;;  %v1409_v6 = vpop.f32.mrb[15].mxu0  ;;  %v943_v63 = vld [vmem:[#allocation2 + $0x30] sm:$0xff] }
 0x2c3   : > { %1523 = vtanh.f32 %v642_v5 }
 0x2c4   : > { %v1522_v7 = vpop.eup %1521 }
 0x2c5   : > { %v647_v8 = vpack.c.bf16 %v1522_v7, %v1522_v7 }
 0x2c7   : > { %1415 = vmatmul.mubr.msk.bf16.vlgmr.msra.gmra.mrb[12].mxu1 %vm371_vm2, %v647_v8 }
 0x2c8   : > { %1427 = vmatpush3.bf16.msra.mxu1 %v1609_v2  ;;  %1430 = vmatprep.mubr.msk.bf16.mxu1 %vm1554_vm0, %v1553_v1 }
 0x2c9   : > { %1428 = vmatprep.subr.bf16.mxu1 %v1553_v1 }
 0x2cc   : > { %1429 = vmatpush3.bf16.msra.mxu1 %v1619_v3 }
 0x2cd   : > { %v1524_v9 = vpop.eup %1523  ;;  %1442 = vmatprep.subr.bf16.mxu1 %v1553_v1 }
 0x2ce   : > { %v692_v10 = vpack.c.bf16 %v1524_v9, %v1524_v9 }
 0x2d0   : > { %v694_v11 = vrot.slane %v692_v10, 2 }
 0x2d2   : > { %1423 = vmatmul.mubr.msk.bf16.vlgmr.msra.gmra.mrb[16].mxu0 %vm371_vm2, %v694_v11 }
 0x2d3   : > { %1435 = vmatpush3.bf16.msra.mxu0 %v1609_v2  ;;  %1438 = vmatprep.mubr.msk.bf16.mxu0 %vm1554_vm0, %v1553_v1 }
 0x2d4   : > { %1436 = vmatprep.subr.bf16.mxu0 %v1553_v1 }
 0x2d7   : > { %1437 = vmatpush3.bf16.msra.mxu0 %v1619_v3 }
 0x2d8   : > { %1450 = vmatprep.subr.bf16.mxu0 %v1553_v1 }
 0x39a   : > { %v685_v13 = vpop.f32.mrb[12].mxu1 }
 0x39b   : > { %v691_v14 = vadd.f32 %v685_v13, %v646_v12  ;;  %v1416_v15 = vpop.f32.mrb[13].mxu1 }
 0x39c   : > { %v688_v16 = vpop.f32.mrb[14].mxu1 }
 0x39d   : > { %1525 = vtanh.f32 %v691_v14  ;;  %v1417_v17 = vpop.f32.mrb[15].mxu1 }
 0x3a5   : > { %v732_v18 = vpop.f32.mrb[16].mxu0 }
 0x3a6   : > { %v739_v19 = vrot.slane %v732_v18, 4  ;;  %v1424_v20 = vpop.f32.mrb[17].mxu0 }
 0x3a7   : > { %v1526_v21 = vpop.eup %1525  ;;  %v735_v22 = vpop.f32.mrb[18].mxu0 }
 0x3a8   : > { %v746_v23 = vpack.c.bf16 %v1526_v21, %v1526_v21  ;;  %v741_v24 = vadd.f32 %v739_v19, %v646_v12  ;;  %v1425_v25 = vpop.f32.mrb[19].mxu0  ;;  %v1042_v21 = vld [vmem:[#allocation2 + $0x38] sm:$0xff] }
 0x3aa   : > { %1527 = vtanh.f32 %v741_v24  ;;  %1431 = vmatmul.mubr.msk.bf16.vlgmr.msra.gmra.mrb[16].mxu1 %vm371_vm2, %v746_v23 }
 0x3ab   : > { %1443 = vmatpush3.bf16.msra.mxu1 %v1609_v2  ;;  %1446 = vmatprep.mubr.msk.bf16.mxu1 %vm1554_vm0, %v1553_v1 }
 0x3ac   : > { %1444 = vmatprep.subr.bf16.mxu1 %v1553_v1 }
 0x3af   : > { %1445 = vmatpush3.bf16.msra.mxu1 %v1619_v3 }
 0x3b0   : > { %1458 = vmatprep.subr.bf16.mxu1 %v1553_v1 }
 0x3b4   : > { %v1528_v26 = vpop.eup %1527 }
 0x3b5   : > { %v791_v27 = vpack.c.bf16 %v1528_v26, %v1528_v26 }
 0x3b7   : > { %v793_v28 = vrot.slane %v791_v27, 2 }
 0x3b9   : > { %1439 = vmatmul.mubr.msk.bf16.vlgmr.msra.gmra.mrb[20].mxu0 %vm371_vm2, %v793_v28 }
 0x3ba   : > { %1451 = vmatpush3.bf16.msra.mxu0 %v1609_v2  ;;  %1454 = vmatprep.mubr.msk.bf16.mxu0 %vm1554_vm0, %v1553_v1 }
 0x3bb   : > { %1452 = vmatprep.subr.bf16.mxu0 %v1553_v1 }
 0x3be   : > { %1453 = vmatpush3.bf16.msra.mxu0 %v1619_v3 }
 0x3bf   : > { %1466 = vmatprep.subr.bf16.mxu0 %v1553_v1 }
 0x47d   : > { %v784_v30 = vpop.f32.mrb[16].mxu1 }
 0x47e   : > { %v790_v31 = vadd.f32 %v784_v30, %v745_v29  ;;  %v1432_v32 = vpop.f32.mrb[17].mxu1 }
 0x47f   : > { %v787_v33 = vpop.f32.mrb[18].mxu1  ;;  %v1144_v32 = vstv %s1143_s14 }
 0x480   : > { %1529 = vtanh.f32 %v790_v31  ;;  %v1433_v34 = vpop.f32.mrb[19].mxu1  ;;  %v1142_v31 = vld [vmem:[%s1759_s4] sm:$0x1] }
 0x48a   : > { %v1530_v35 = vpop.eup %1529 }
 0x48b   : > { %v845_v36 = vpack.c.bf16 %v1530_v35, %v1530_v35 }
 0x48c   : > { %v831_v37 = vpop.f32.mrb[20].mxu0 }
 0x48d   : > { %v838_v38 = vrot.slane %v831_v37, 4  ;;  %v1440_v39 = vpop.f32.mrb[21].mxu0  ;;  %1447 = vmatmul.mubr.msk.bf16.vlgmr.msra.gmra.mrb[20].mxu1 %vm371_vm2, %v845_v36 }
 0x48e   : > { %v834_v40 = vpop.f32.mrb[22].mxu0  ;;  %1459 = vmatpush3.bf16.msra.mxu1 %v1609_v2  ;;  %1462 = vmatprep.mubr.msk.bf16.mxu1 %vm1554_vm0, %v1553_v1 }
 0x48f   : > { %v840_v41 = vadd.f32 %v838_v38, %v745_v29  ;;  %v1441_v42 = vpop.f32.mrb[23].mxu0  ;;  %1460 = vmatprep.subr.bf16.mxu1 %v1553_v1 }
 0x491   : > { %1531 = vtanh.f32 %v840_v41 }
 0x492   : > { %1461 = vmatpush3.bf16.msra.mxu1 %v1619_v3 }
 0x493   : > { %1474 = vmatprep.subr.bf16.mxu1 %v1553_v1 }
 0x49b   : > { %v1532_v43 = vpop.eup %1531 }
 0x49c   : > { %v890_v44 = vpack.c.bf16 %v1532_v43, %v1532_v43 }
 0x49e   : > { %v892_v45 = vrot.slane %v890_v44, 2 }
 0x4a0   : > { %1455 = vmatmul.mubr.msk.bf16.vlgmr.msra.gmra.mrb[24].mxu0 %vm371_vm2, %v892_v45 }
 0x4a1   : > { %1467 = vmatpush3.bf16.msra.mxu0 %v1609_v2  ;;  %1470 = vmatprep.mubr.msk.bf16.mxu0 %vm1554_vm0, %v1553_v1 }
 0x4a2   : > { %1468 = vmatprep.subr.bf16.mxu0 %v1553_v1 }
 0x4a5   : > { %1469 = vmatpush3.bf16.msra.mxu0 %v1619_v3 }
 0x4a6   : > { %1482 = vmatprep.subr.bf16.mxu0 %v1553_v1 }
 0x560   : > { %v883_v47 = vpop.f32.mrb[20].mxu1 }
 0x561   : > { %v889_v48 = vadd.f32 %v883_v47, %v844_v46  ;;  %v1448_v49 = vpop.f32.mrb[21].mxu1 }
 0x562   : > { %v886_v50 = vpop.f32.mrb[22].mxu1 }
 0x563   : > { %1533 = vtanh.f32 %v889_v48  ;;  %v1449_v51 = vpop.f32.mrb[23].mxu1 }
 0x56d   : > { %v1534_v52 = vpop.eup %1533 }
 0x56e   : > { %v944_v53 = vpack.c.bf16 %v1534_v52, %v1534_v52 }
 0x570   : > { %1463 = vmatmul.mubr.msk.bf16.vlgmr.msra.gmra.mrb[24].mxu1 %vm371_vm2, %v944_v53 }
 0x571   : > { %1475 = vmatpush3.bf16.msra.mxu1 %v1609_v2  ;;  %1478 = vmatprep.mubr.msk.bf16.mxu1 %vm1554_vm0, %v1553_v1 }
 0x572   : > { %1476 = vmatprep.subr.bf16.mxu1 %v1553_v1 }
 0x573   : > { %v930_v54 = vpop.f32.mrb[24].mxu0 }
 0x574   : > { %v937_v55 = vrot.slane %v930_v54, 4  ;;  %v1456_v56 = vpop.f32.mrb[25].mxu0 }
 0x575   : > { %v933_v57 = vpop.f32.mrb[26].mxu0  ;;  %1477 = vmatpush3.bf16.msra.mxu1 %v1619_v3 }
 0x576   : > { %v939_v58 = vadd.f32 %v937_v55, %v844_v46  ;;  %v1457_v59 = vpop.f32.mrb[27].mxu0  ;;  %1490 = vmatprep.subr.mxu1 %v1553_v1 }
 0x578   : > { %1535 = vtanh.f32 %v939_v58 }
 0x582   : > { %v1536_v60 = vpop.eup %1535 }
 0x583   : > { %v989_v61 = vpack.c.bf16 %v1536_v60, %v1536_v60 }
 0x585   : > { %v991_v62 = vrot.slane %v989_v61, 2 }
 0x587   : > { %1471 = vmatmul.mubr.msk.bf16.vlgmr.msra.gmra.mrb[28].mxu0 %vm371_vm2, %v991_v62 }
 0x588   : > { %1483 = vmatpush3.bf16.msra.mxu0 %v1609_v2  ;;  %1486 = vmatprep.mubr.msk.bf16.mxu0 %vm1554_vm0, %v1553_v1 }
 0x589   : > { %1484 = vmatprep.subr.bf16.mxu0 %v1553_v1 }
 0x58c   : > { %1485 = vmatpush3.bf16.msra.mxu0 %v1619_v3 }
 0x643   : > { %v982_v0 = vpop.f32.mrb[24].mxu1 }
 0x644   : > { %v988_v4 = vadd.f32 %v982_v0, %v943_v63  ;;  %v1464_v5 = vpop.f32.mrb[25].mxu1 }
 0x645   : > { %v985_v6 = vpop.f32.mrb[26].mxu1 }
 0x646   : > { %1537 = vtanh.f32 %v988_v4  ;;  %v1465_v7 = vpop.f32.mrb[27].mxu1 }
 0x650   : > { %v1538_v8 = vpop.eup %1537 }
 0x651   : > { %v1043_v9 = vpack.c.bf16 %v1538_v8, %v1538_v8 }
 0x653   : > { %1479 = vmatmul.mubr.msk.bf16.vlgmr.msra.gmra.mrb[28].mxu1 %vm371_vm2, %v1043_v9 }
 0x654   : > { %1492 = vmatprep.mubr.msk.f32.mxu1 %vm1554_vm0, %v1553_v1 }
 0x65a   : > { %v1029_v2 = vpop.f32.mrb[28].mxu0 }
 0x65b   : > { %v1036_v10 = vrot.slane %v1029_v2, 4  ;;  %v1472_v11 = vpop.f32.mrb[29].mxu0 }
 0x65c   : > { %v1032_v12 = vpop.f32.mrb[30].mxu0 }
 0x65d   : > { %v1038_v13 = vadd.f32 %v1036_v10, %v943_v63  ;;  %v1473_v3 = vpop.f32.mrb[31].mxu0 }
 0x65f   : > { %1539 = vtanh.f32 %v1038_v13 }
 0x669   : > { %v1540_v14 = vpop.eup %1539 }
 0x66a   : > { %v1088_v15 = vpack.c.bf16 %v1540_v14, %v1540_v14 }
 0x66c   : > { %v1090_v16 = vrot.slane %v1088_v15, 2 }
 0x66e   : > { %1487 = vmatmul.mubr.msk.bf16.vlgmr.msra.gmra.mrb[32].mxu0 %vm371_vm2, %v1090_v16 }
 0x726   : > { %v1081_v17 = vpop.f32.mrb[28].mxu1 }
 0x727   : > { %v1480_v18 = vpop.f32.mrb[29].mxu1  ;;  %v1087_v22 = vadd.f32 %v1081_v17, %v1042_v21 }
 0x728   : > { %v1084_v19 = vpop.f32.mrb[30].mxu1 }
 0x729   : > { %v1481_v20 = vpop.f32.mrb[31].mxu1  ;;  %1541 = vtanh.f32 %v1087_v22 }
 0x733   : > { %v1542_v28 = vpop.eup %1541 }
 0x741   : > { %v1128_v23 = vpop.f32.mrb[32].mxu0 }
 0x742   : > { %v1135_v1 = vrot.slane %v1128_v23, 4  ;;  %v1488_v24 = vpop.f32.mrb[33].mxu0 }
 0x743   : > { %v1131_v25 = vpop.f32.mrb[34].mxu0 }
 0x744   : > { %v1137_v26 = vadd.f32 %v1135_v1, %v1042_v21  ;;  %v1489_v27 = vpop.f32.mrb[35].mxu0 }
 0x746   : > { %1543 = vtanh.f32 %v1137_v26 }
 0x750   : > { %v1544_v29 = vpop.eup %1543 }
 0x751   : > { %v1141_v30 = vsel %vm1140_vm3, %v1542_v28, %v1544_v29 }
 0x752   : > { %1491 = vmatpush3.xpose.msk.msra.mxu1 %vm371_vm2, %v1141_v30 }
 0x755   : > { %1493 = vmatmul.mubr.msk.f32.vlgmr.msra.gmra.mrb[32].mxu1 %vm371_vm2, %v1142_v31 }
 0x828   : > { %v1217_v33 = vpop.f32.mrb[32].mxu1 }
 0x829   : > { %v1218_v34 = vadd.f32 %v1217_v33, %v1144_v32  ;;  %v1494_v35 = vpop.f32.mrb[33].mxu1 }
 0x82b   : > { %1222 = vst.msk [vmem:[%s248_s17] sm:$0x1] %vm1221_vm4, %v1218_v34 }
 0x82c PF: > { %s17_s23 = sadd.s32 1, %s1551_s23  }
 0x82d   : > { %p14_p4 = scmp.ge.s32.totalorder %s17_s23, 4  }
 0x82f   :  { %16 = sbr.rel (!%p14_p4) target bundleno = 2 (0x2), region = 81 }

</bundles_post_ra>
